<compile_context>
chip_gen: v7x
topology: tpu7x:2x2x1
jax: 0.10.0
libtpu: 0.0.40
codegen_flags: <defaults>
</compile_context>

<pallas_src>
import functools

import jax
import jax.numpy as jnp
import numpy as np
from jax import lax
from jax.experimental import pallas as pl
from jax.experimental.pallas import tpu as pltpu

LN_EPS = 1e-5  # PyTorch nn.LayerNorm default


def _round_up(x, m):
    return ((x + m - 1) // m) * m


def _const_spec(a):
    # Whole-array block, same block every grid step -> fetched once, stays in VMEM.
    return pl.BlockSpec(a.shape, lambda i: (0,) * a.ndim)


def _block_diag(mats):
    rows = sum(int(m.shape[0]) for m in mats)
    cols = sum(int(m.shape[1]) for m in mats)
    out = jnp.zeros((rows, cols), mats[0].dtype)
    r = c = 0
    for m in mats:
        out = out.at[r:r + m.shape[0], c:c + m.shape[1]].set(m)
        r += int(m.shape[0])
        c += int(m.shape[1])
    return out


def _choose_tiling(B, tile_b):
    """Lane-aligned batch tile; keep >= 2 grid steps when possible (v7x has 2 TCs)."""
    Bp = _round_up(max(int(B), 1), 128)
    tile_b = _round_up(max(int(tile_b), 128), 128)
    if Bp >= 256:
        # cap so the batch grid has at least 2 steps (megacore sharding on v7x)
        tile_b = min(tile_b, max(128, (Bp // 2) // 128 * 128))
    tile_b = min(tile_b, Bp)
    Bp = _round_up(Bp, tile_b)
    return tile_b, Bp


def _build_kernel(num_blocks, mask_dims, has_fc, fc_elementwise):
    """Fused feature-major SerialMaskNet kernel, closed over the static structure."""

    def kernel(*refs):
        # ref order: v_emb_t, v_hid_t, w1c_t, b1c_t, w2bd_t, b2c_t,
        #            [w3_t, gamma_t, beta_t] * num_blocks,
        #            [wfc, bfc_t] (if has_fc),  out_ref
        v_emb_ref, v_hid_ref, w1_ref, b1_ref, w2_ref, b2_ref = refs[:6]
        pos = 6
        blk = []
        for _ in range(num_blocks):
            blk.append(refs[pos:pos + 3])
            pos += 3
        if has_fc:
            wfc_ref, bfc_ref = refs[pos], refs[pos + 1]
            pos += 2
        out_ref = refs[pos]

        # --- all mask-layer matmuls depend only on V_emb, never on v_out ->
        # hoisted out of the serial chain and fused into two MXU passes.
        v_emb_b = v_emb_ref[...].astype(jnp.bfloat16)
        h1_all = jnp.dot(w1_ref[...], v_emb_b,
                         preferred_element_type=jnp.float32) + b1_ref[...]
        h1_all = jnp.maximum(h1_all, 0.0)                       # (sum_hr, tile_b)
        vmask_all = jnp.dot(w2_ref[...], h1_all.astype(jnp.bfloat16),
                            preferred_element_type=jnp.float32) + b2_ref[...]
        # vmask_all: (sum_hidden, tile_b); per-block V_mask = static sublane slice.

        # --- serial chain: only W3 matmul + LayerNorm stay serialized ---
        v_out = v_hid_ref[...]
        off = 0
        for b in range(num_blocks):
            w3_ref, g_ref, be_ref = blk[b]
            md = mask_dims[b]
            v_mask = vmask_all[off:off + md, :]
            off += md
            masked = v_mask * v_out                             # f32, full 128 lanes
            z = jnp.dot(w3_ref[...], masked.astype(jnp.bfloat16),
                        preferred_element_type=jnp.float32)     # (out_dim, tile_b)
            # two-pass LayerNorm stats over the feature (sublane) axis
            mean = jnp.mean(z, axis=0, keepdims=True)
            d = z - mean
            var = jnp.mean(d * d, axis=0, keepdims=True)
            zn = d * lax.rsqrt(var + LN_EPS)
            v_out = jnp.maximum(zn * g_ref[...] + be_ref[...], 0.0)

        if has_fc:
            if fc_elementwise:
                # final_dim == 1: VPU multiply + short sublane reduce (no N=1 MXU op)
                v_out = jnp.sum(v_out * wfc_ref[...], axis=0,
                                keepdims=True) + bfc_ref[...]
            else:
                v_out = jnp.dot(wfc_ref[...], v_out.astype(jnp.bfloat16),
                                preferred_element_type=jnp.float32) + bfc_ref[...]
        out_ref[...] = v_out.astype(out_ref.dtype)              # lane-dense store

    return kernel


def serial_masknet(v_emb, v_hidden, blocks, fc_params, *, tile_b=1024):
    """Fused forward pass: one pallas_call for all MaskBlocks + optional final fc."""
    assert len(blocks) >= 1
    B, input_dim = v_emb.shape
    hid0 = int(v_hidden.shape[1])
    num_blocks = len(blocks)
    hr_sizes = [int(p["w1"].shape[1]) for p in blocks]
    mask_dims = [int(p["w2"].shape[1]) for p in blocks]
    out_dims = [int(p["w3"].shape[1]) for p in blocks]
    has_fc = fc_params is not None
    final_dim = int(fc_params["w"].shape[1]) if has_fc else out_dims[-1]
    fc_elementwise = has_fc and final_dim == 1

    # --- feature-major batch tiling: batch on the 128-lane axis ---
    tile_b, Bp = _choose_tiling(B, tile_b)
    pad = Bp - B
    if pad:
        v_emb = jnp.pad(v_emb, ((0, pad), (0, 0)))
        v_hidden = jnp.pad(v_hidden, ((0, pad), (0, 0)))
    v_emb_t = v_emb.T       # (input_dim, Bp)   wrapper-side layout plumbing
    v_hid_t = v_hidden.T    # (hid0, Bp)
    grid = (Bp // tile_b,)

    # --- weights: transpose to feature-major, cast MXU operands to bf16, fuse ---
    w1c_t = jnp.concatenate([p["w1"] for p in blocks], axis=1).T.astype(jnp.bfloat16)
    b1c_t = jnp.concatenate([p["b1"] for p in blocks], axis=1).T
    w2bd_t = _block_diag([p["w2"].T for p in blocks]).astype(jnp.bfloat16)
    b2c_t = jnp.concatenate([p["b2"] for p in blocks], axis=1).T

    args = [v_emb_t, v_hid_t, w1c_t, b1c_t, w2bd_t, b2c_t]
    in_specs = [
        pl.BlockSpec((input_dim, tile_b), lambda i: (0, i)),
        pl.BlockSpec((hid0, tile_b), lambda i: (0, i)),
        _const_spec(w1c_t), _const_spec(b1c_t),
        _const_spec(w2bd_t), _const_spec(b2c_t),
    ]
    for p in blocks:
        w3_t = p["w3"].T.astype(jnp.bfloat16)
        g_t = p["gamma"].T
        be_t = p["beta"].T
        for a in (w3_t, g_t, be_t):
            args.append(a)
            in_specs.append(_const_spec(a))
    if has_fc:
        if fc_elementwise:
            wfc = fc_params["w"]                            # (last_dim, 1), f32 VPU path
        else:
            wfc = fc_params["w"].T.astype(jnp.bfloat16)     # (final_dim, last_dim)
        bfc_t = fc_params["b"].T                            # (final_dim, 1)
        args += [wfc, bfc_t]
        in_specs += [_const_spec(wfc), _const_spec(bfc_t)]

    # --- advisory cost estimate ---
    sum_hr, sum_hidden = sum(hr_sizes), sum(mask_dims)
    flops = 2 * Bp * (input_dim * sum_hr + sum_hr * sum_hidden)
    for b in range(num_blocks):
        flops += 2 * Bp * mask_dims[b] * out_dims[b]
    if has_fc:
        flops += 2 * Bp * out_dims[-1] * final_dim
    transcendentals = Bp * num_blocks  # one rsqrt per column per LayerNorm
    bytes_accessed = Bp * final_dim * 4
    for a in args:
        bytes_accessed += int(np.prod(a.shape)) * jnp.dtype(a.dtype).itemsize

    out_t = pl.pallas_call(
        _build_kernel(num_blocks, mask_dims, has_fc, fc_elementwise),
        out_shape=jax.ShapeDtypeStruct((final_dim, Bp), jnp.float32),
        grid=grid,
        in_specs=in_specs,
        out_specs=pl.BlockSpec((final_dim, tile_b), lambda i: (0, i)),
        compiler_params=pltpu.CompilerParams(
            dimension_semantics=("parallel",),
            vmem_limit_bytes=32 * 1024 * 1024),  # tiny footprint; safe on v7x's 64 MiB
        cost_estimate=pl.CostEstimate(flops=int(flops),
                                      transcendentals=int(transcendentals),
                                      bytes_accessed=int(bytes_accessed)),
    )(*args)
    # back to the PyTorch-facing (B, final_dim) layout
    return out_t[:, :B].T


# ---------------------------------------------------------------------------
# Parameter init + pure-JAX references
# ---------------------------------------------------------------------------

def init_params(key, input_dim, hidden_units, reduction_ratio, output_dim):
    dims = [input_dim] + list(hidden_units)
    blocks = []
    for idx in range(len(dims) - 1):
        hidden_dim = dims[idx]
        out_dim = dims[idx + 1]
        hr = int(hidden_dim * reduction_ratio)
        key, k1, k2, k3 = jax.random.split(key, 4)
        blocks.append(dict(
            w1=jax.random.normal(k1, (input_dim, hr), jnp.float32) * 0.1,
            b1=jnp.zeros((1, hr), jnp.float32),
            w2=jax.random.normal(k2, (hr, hidden_dim), jnp.float32) * 0.1,
            b2=jnp.zeros((1, hidden_dim), jnp.float32),
            w3=jax.random.normal(k3, (hidden_dim, out_dim), jnp.float32) * 0.1,
            gamma=jnp.ones((1, out_dim), jnp.float32),
            beta=jnp.zeros((1, out_dim), jnp.float32),
        ))
    fc_p = None
    if output_dim is not None:
        key, kf = jax.random.split(key)
        fc_p = dict(
            w=jax.random.normal(kf, (dims[-1], output_dim), jnp.float32) * 0.1,
            b=jnp.zeros((1, output_dim), jnp.float32),
        )
    return blocks, fc_p


def serial_masknet_ref_mirror(v_emb, v_hidden, blocks, fc_params):
    """Pure-JAX reference mirroring kernel numerics (bf16 MXU operands, f32 acc)."""
    v_emb_b = v_emb.astype(jnp.bfloat16)
    v_out = v_hidden
    for p in blocks:
        h1 = jnp.dot(v_emb_b, p["w1"].astype(jnp.bfloat16),
                     preferred_element_type=jnp.float32) + p["b1"]
        h1 = jnp.maximum(h1, 0.0)
        v_mask = jnp.dot(h1.astype(jnp.bfloat16), p["w2"].astype(jnp.bfloat16),
                         preferred_element_type=jnp.float32) + p["b2"]
        masked = v_mask * v_out
        z = jnp.dot(masked.astype(jnp.bfloat16), p["w3"].astype(jnp.bfloat16),
                    preferred_element_type=jnp.float32)
        mean = jnp.mean(z, axis=-1, keepdims=True)
        d = z - mean
        var = jnp.mean(d * d, axis=-1, keepdims=True)
        zn = d * lax.rsqrt(var + LN_EPS)
        v_out = jnp.maximum(zn * p["gamma"] + p["beta"], 0.0)
    if fc_params is not None:
        if int(fc_params["w"].shape[1]) == 1:
            v_out = v_out @ fc_params["w"] + fc_params["b"]           # f32 VPU path
        else:
            v_out = jnp.dot(v_out.astype(jnp.bfloat16),
                            fc_params["w"].astype(jnp.bfloat16),
                            preferred_element_type=jnp.float32) + fc_params["b"]
    return v_out


def serial_masknet_ref_f32(v_emb, v_hidden, blocks, fc_params):
    """Pure f32 reference (PyTorch module semantics)."""
    v_out = v_hidden
    for p in blocks:
        h1 = jnp.maximum(v_emb @ p["w1"] + p["b1"], 0.0)
        v_mask = h1 @ p["w2"] + p["b2"]
        masked = v_mask * v_out
        z = masked @ p["w3"]
        mean = jnp.mean(z, axis=-1, keepdims=True)
        var = jnp.mean((z - mean) ** 2, axis=-1, keepdims=True)
        zn = (z - mean) / jnp.sqrt(var + LN_EPS)
        v_out = jnp.maximum(zn * p["gamma"] + p["beta"], 0.0)
    if fc_params is not None:
        v_out = v_out @ fc_params["w"] + fc_params["b"]
    return v_out


if __name__ == "__main__":
    key = jax.random.PRNGKey(0)

    # shapes consistent with SerialMaskNet(input_dim=32, hidden_units=[32,16],
    # reduction_ratio=1, output_dim=1); batch sized to exercise a multi-step grid.
    B = 512
    input_dim = 32
    hidden_units = [32, 16]
    reduction_ratio = 1
    output_dim = 1

    key, ke, kh, kp = jax.random.split(key, 4)
    V_emb = jax.random.normal(ke, (B, input_dim), jnp.float32)
    # v_out starts as V_hidden and is masked with width hidden_units[0]
    # (= input_dim for the first block), so V_hidden is (B, input_dim).
    V_hidden = jax.random.normal(kh, (B, input_dim), jnp.float32)

    blocks, fc_params = init_params(kp, input_dim, hidden_units,
                                    reduction_ratio, output_dim)

    fwd = jax.jit(functools.partial(serial_masknet, tile_b=1024))
    out = jax.block_until_ready(fwd(V_emb, V_hidden, blocks, fc_params))

    # tight check against a reference that mirrors the kernel numerics
    ref_bf16 = serial_masknet_ref_mirror(V_emb, V_hidden, blocks, fc_params)
    np.testing.assert_allclose(np.asarray(out), np.asarray(ref_bf16),
                               rtol=2e-3, atol=2e-3)

    # looser check against pure-f32 PyTorch-equivalent semantics
    ref_f32 = serial_masknet_ref_f32(V_emb, V_hidden, blocks, fc_params)
    np.testing.assert_allclose(np.asarray(out), np.asarray(ref_f32),
                               rtol=5e-2, atol=5e-2)

    print("KERNEL_OK")
</pallas_src>

<mosaic_0001>
module attributes {stable_mosaic.version = 11 : i64} {
  func.func @kernel(%arg0: i32, %arg1: memref<32x256xf32, #tpu.memory_space<vmem>>, %arg2: memref<32x256xf32, #tpu.memory_space<vmem>>, %arg3: memref<64x32xbf16, #tpu.memory_space<vmem>>, %arg4: memref<64x1xf32, #tpu.memory_space<vmem>>, %arg5: memref<64x64xbf16, #tpu.memory_space<vmem>>, %arg6: memref<64x1xf32, #tpu.memory_space<vmem>>, %arg7: memref<32x32xbf16, #tpu.memory_space<vmem>>, %arg8: memref<32x1xf32, #tpu.memory_space<vmem>>, %arg9: memref<32x1xf32, #tpu.memory_space<vmem>>, %arg10: memref<16x32xbf16, #tpu.memory_space<vmem>>, %arg11: memref<16x1xf32, #tpu.memory_space<vmem>>, %arg12: memref<16x1xf32, #tpu.memory_space<vmem>>, %arg13: memref<16x1xf32, #tpu.memory_space<vmem>>, %arg14: memref<1x1xf32, #tpu.memory_space<vmem>>, %arg15: memref<1x256xf32, #tpu.memory_space<vmem>>) attributes {dimension_semantics = [#tpu.dimension_semantics<parallel>], iteration_bounds = array<i64: 2>, scalar_prefetch = 0 : i64, scratch_operands = 0 : i64, tpu.core_type = #tpu.core_type<tc>, window_params = [{transform_indices = @transform_0, window_bounds = array<i64: 32, 256>}, {transform_indices = @transform_1, window_bounds = array<i64: 32, 256>}, {pipeline_mode = #tpu.pipeline_mode<synchronous>, transform_indices = @transform_2, window_bounds = array<i64: 64, 32>}, {pipeline_mode = #tpu.pipeline_mode<synchronous>, transform_indices = @transform_3, window_bounds = array<i64: 64, 1>}, {pipeline_mode = #tpu.pipeline_mode<synchronous>, transform_indices = @transform_4, window_bounds = array<i64: 64, 64>}, {pipeline_mode = #tpu.pipeline_mode<synchronous>, transform_indices = @transform_5, window_bounds = array<i64: 64, 1>}, {pipeline_mode = #tpu.pipeline_mode<synchronous>, transform_indices = @transform_6, window_bounds = array<i64: 32, 32>}, {pipeline_mode = #tpu.pipeline_mode<synchronous>, transform_indices = @transform_7, window_bounds = array<i64: 32, 1>}, {pipeline_mode = #tpu.pipeline_mode<synchronous>, transform_indices = @transform_8, window_bounds = array<i64: 32, 1>}, {pipeline_mode = #tpu.pipeline_mode<synchronous>, transform_indices = @transform_9, window_bounds = array<i64: 16, 32>}, {pipeline_mode = #tpu.pipeline_mode<synchronous>, transform_indices = @transform_10, window_bounds = array<i64: 16, 1>}, {pipeline_mode = #tpu.pipeline_mode<synchronous>, transform_indices = @transform_11, window_bounds = array<i64: 16, 1>}, {pipeline_mode = #tpu.pipeline_mode<synchronous>, transform_indices = @transform_12, window_bounds = array<i64: 16, 1>}, {pipeline_mode = #tpu.pipeline_mode<synchronous>, transform_indices = @transform_13, window_bounds = array<i64: 1, 1>}, {transform_indices = @transform_14, window_bounds = array<i64: 1, 256>}]} {
    %c0 = arith.constant 0 : index
    %c0_0 = arith.constant 0 : index
    %0 = vector.load %arg1[%c0, %c0_0] : memref<32x256xf32, #tpu.memory_space<vmem>>, vector<32x256xf32>
    %1 = arith.truncf %0 : vector<32x256xf32> to vector<32x256xbf16>
    %c0_1 = arith.constant 0 : index
    %c0_2 = arith.constant 0 : index
    %2 = vector.load %arg3[%c0_1, %c0_2] : memref<64x32xbf16, #tpu.memory_space<vmem>>, vector<64x32xbf16>
    %cst = arith.constant dense<0.000000e+00> : vector<64x256xf32>
    %3 = tpu.matmul %2, %1, %cst {dimension_numbers = #tpu.dot_dimension_numbers<[1], [0], [0], [1], [0, 0, 1, 1], [], []>} : vector<64x32xbf16>, vector<32x256xbf16>, vector<64x256xf32> -> vector<64x256xf32>
    %c0_3 = arith.constant 0 : index
    %c0_4 = arith.constant 0 : index
    %4 = vector.load %arg4[%c0_3, %c0_4] : memref<64x1xf32, #tpu.memory_space<vmem>>, vector<64x1xf32>
    %5 = vector.broadcast %4 : vector<64x1xf32> to vector<64x256xf32>
    %6 = arith.addf %3, %5 : vector<64x256xf32>
    %cst_5 = arith.constant 0.000000e+00 : f32
    %7 = vector.broadcast %cst_5 : f32 to vector<64x256xf32>
    %8 = arith.maximumf %6, %7 : vector<64x256xf32>
    %c0_6 = arith.constant 0 : index
    %c0_7 = arith.constant 0 : index
    %9 = vector.load %arg5[%c0_6, %c0_7] : memref<64x64xbf16, #tpu.memory_space<vmem>>, vector<64x64xbf16>
    %10 = arith.truncf %8 : vector<64x256xf32> to vector<64x256xbf16>
    %cst_8 = arith.constant dense<0.000000e+00> : vector<64x256xf32>
    %11 = tpu.matmul %9, %10, %cst_8 {dimension_numbers = #tpu.dot_dimension_numbers<[1], [0], [0], [1], [0, 0, 1, 1], [], []>} : vector<64x64xbf16>, vector<64x256xbf16>, vector<64x256xf32> -> vector<64x256xf32>
    %c0_9 = arith.constant 0 : index
    %c0_10 = arith.constant 0 : index
    %12 = vector.load %arg6[%c0_9, %c0_10] : memref<64x1xf32, #tpu.memory_space<vmem>>, vector<64x1xf32>
    %13 = vector.broadcast %12 : vector<64x1xf32> to vector<64x256xf32>
    %14 = arith.addf %11, %13 : vector<64x256xf32>
    %c0_11 = arith.constant 0 : index
    %c0_12 = arith.constant 0 : index
    %15 = vector.load %arg2[%c0_11, %c0_12] : memref<32x256xf32, #tpu.memory_space<vmem>>, vector<32x256xf32>
    %16 = vector.extract_strided_slice %14 {offsets = [0, 0], sizes = [32, 256], strides = [1, 1]} : vector<64x256xf32> to vector<32x256xf32>
    %17 = arith.mulf %16, %15 : vector<32x256xf32>
    %c0_13 = arith.constant 0 : index
    %c0_14 = arith.constant 0 : index
    %18 = vector.load %arg7[%c0_13, %c0_14] : memref<32x32xbf16, #tpu.memory_space<vmem>>, vector<32x32xbf16>
    %19 = arith.truncf %17 : vector<32x256xf32> to vector<32x256xbf16>
    %cst_15 = arith.constant dense<0.000000e+00> : vector<32x256xf32>
    %20 = tpu.matmul %18, %19, %cst_15 {dimension_numbers = #tpu.dot_dimension_numbers<[1], [0], [0], [1], [0, 0, 1, 1], [], []>} : vector<32x32xbf16>, vector<32x256xbf16>, vector<32x256xf32> -> vector<32x256xf32>
    %cst_16 = arith.constant dense<0.000000e+00> : vector<256xf32>
    %21 = vector.multi_reduction <add>, %20, %cst_16 [0] : vector<32x256xf32> to vector<256xf32>
    %22 = vector.shape_cast %21 : vector<256xf32> to vector<1x256xf32>
    %cst_17 = arith.constant 3.200000e+01 : f32
    %23 = vector.broadcast %cst_17 : f32 to vector<1x256xf32>
    %24 = arith.divf %22, %23 : vector<1x256xf32>
    %25 = vector.broadcast %24 : vector<1x256xf32> to vector<32x256xf32>
    %26 = arith.subf %20, %25 : vector<32x256xf32>
    %27 = arith.mulf %26, %26 : vector<32x256xf32>
    %cst_18 = arith.constant dense<0.000000e+00> : vector<256xf32>
    %28 = vector.multi_reduction <add>, %27, %cst_18 [0] : vector<32x256xf32> to vector<256xf32>
    %29 = vector.shape_cast %28 : vector<256xf32> to vector<1x256xf32>
    %cst_19 = arith.constant 3.200000e+01 : f32
    %30 = vector.broadcast %cst_19 : f32 to vector<1x256xf32>
    %31 = arith.divf %29, %30 : vector<1x256xf32>
    %cst_20 = arith.constant 9.99999974E-6 : f32
    %32 = vector.broadcast %cst_20 : f32 to vector<1x256xf32>
    %33 = arith.addf %31, %32 : vector<1x256xf32>
    %34 = math.rsqrt %33 : vector<1x256xf32>
    %35 = vector.broadcast %34 : vector<1x256xf32> to vector<32x256xf32>
    %36 = arith.mulf %26, %35 : vector<32x256xf32>
    %c0_21 = arith.constant 0 : index
    %c0_22 = arith.constant 0 : index
    %37 = vector.load %arg8[%c0_21, %c0_22] : memref<32x1xf32, #tpu.memory_space<vmem>>, vector<32x1xf32>
    %38 = vector.broadcast %37 : vector<32x1xf32> to vector<32x256xf32>
    %39 = arith.mulf %36, %38 : vector<32x256xf32>
    %c0_23 = arith.constant 0 : index
    %c0_24 = arith.constant 0 : index
    %40 = vector.load %arg9[%c0_23, %c0_24] : memref<32x1xf32, #tpu.memory_space<vmem>>, vector<32x1xf32>
    %41 = vector.broadcast %40 : vector<32x1xf32> to vector<32x256xf32>
    %42 = arith.addf %39, %41 : vector<32x256xf32>
    %cst_25 = arith.constant 0.000000e+00 : f32
    %43 = vector.broadcast %cst_25 : f32 to vector<32x256xf32>
    %44 = arith.maximumf %42, %43 : vector<32x256xf32>
    %45 = vector.extract_strided_slice %14 {offsets = [32, 0], sizes = [32, 256], strides = [1, 1]} : vector<64x256xf32> to vector<32x256xf32>
    %46 = arith.mulf %45, %44 : vector<32x256xf32>
    %c0_26 = arith.constant 0 : index
    %c0_27 = arith.constant 0 : index
    %47 = vector.load %arg10[%c0_26, %c0_27] : memref<16x32xbf16, #tpu.memory_space<vmem>>, vector<16x32xbf16>
    %48 = arith.truncf %46 : vector<32x256xf32> to vector<32x256xbf16>
    %cst_28 = arith.constant dense<0.000000e+00> : vector<16x256xf32>
    %49 = tpu.matmul %47, %48, %cst_28 {dimension_numbers = #tpu.dot_dimension_numbers<[1], [0], [0], [1], [0, 0, 1, 1], [], []>} : vector<16x32xbf16>, vector<32x256xbf16>, vector<16x256xf32> -> vector<16x256xf32>
    %cst_29 = arith.constant dense<0.000000e+00> : vector<256xf32>
    %50 = vector.multi_reduction <add>, %49, %cst_29 [0] : vector<16x256xf32> to vector<256xf32>
    %51 = vector.shape_cast %50 : vector<256xf32> to vector<1x256xf32>
    %cst_30 = arith.constant 1.600000e+01 : f32
    %52 = vector.broadcast %cst_30 : f32 to vector<1x256xf32>
    %53 = arith.divf %51, %52 : vector<1x256xf32>
    %54 = vector.broadcast %53 : vector<1x256xf32> to vector<16x256xf32>
    %55 = arith.subf %49, %54 : vector<16x256xf32>
    %56 = arith.mulf %55, %55 : vector<16x256xf32>
    %cst_31 = arith.constant dense<0.000000e+00> : vector<256xf32>
    %57 = vector.multi_reduction <add>, %56, %cst_31 [0] : vector<16x256xf32> to vector<256xf32>
    %58 = vector.shape_cast %57 : vector<256xf32> to vector<1x256xf32>
    %cst_32 = arith.constant 1.600000e+01 : f32
    %59 = vector.broadcast %cst_32 : f32 to vector<1x256xf32>
    %60 = arith.divf %58, %59 : vector<1x256xf32>
    %cst_33 = arith.constant 9.99999974E-6 : f32
    %61 = vector.broadcast %cst_33 : f32 to vector<1x256xf32>
    %62 = arith.addf %60, %61 : vector<1x256xf32>
    %63 = math.rsqrt %62 : vector<1x256xf32>
    %64 = vector.broadcast %63 : vector<1x256xf32> to vector<16x256xf32>
    %65 = arith.mulf %55, %64 : vector<16x256xf32>
    %c0_34 = arith.constant 0 : index
    %c0_35 = arith.constant 0 : index
    %66 = vector.load %arg11[%c0_34, %c0_35] : memref<16x1xf32, #tpu.memory_space<vmem>>, vector<16x1xf32>
    %67 = vector.broadcast %66 : vector<16x1xf32> to vector<16x256xf32>
    %68 = arith.mulf %65, %67 : vector<16x256xf32>
    %c0_36 = arith.constant 0 : index
    %c0_37 = arith.constant 0 : index
    %69 = vector.load %arg12[%c0_36, %c0_37] : memref<16x1xf32, #tpu.memory_space<vmem>>, vector<16x1xf32>
    %70 = vector.broadcast %69 : vector<16x1xf32> to vector<16x256xf32>
    %71 = arith.addf %68, %70 : vector<16x256xf32>
    %cst_38 = arith.constant 0.000000e+00 : f32
    %72 = vector.broadcast %cst_38 : f32 to vector<16x256xf32>
    %73 = arith.maximumf %71, %72 : vector<16x256xf32>
    %c0_39 = arith.constant 0 : index
    %c0_40 = arith.constant 0 : index
    %74 = vector.load %arg13[%c0_39, %c0_40] : memref<16x1xf32, #tpu.memory_space<vmem>>, vector<16x1xf32>
    %75 = vector.broadcast %74 : vector<16x1xf32> to vector<16x256xf32>
    %76 = arith.mulf %73, %75 : vector<16x256xf32>
    %cst_41 = arith.constant dense<0.000000e+00> : vector<256xf32>
    %77 = vector.multi_reduction <add>, %76, %cst_41 [0] : vector<16x256xf32> to vector<256xf32>
    %78 = vector.shape_cast %77 : vector<256xf32> to vector<1x256xf32>
    %c0_42 = arith.constant 0 : index
    %c0_43 = arith.constant 0 : index
    %79 = vector.load %arg14[%c0_42, %c0_43] : memref<1x1xf32, #tpu.memory_space<vmem>>, vector<1x1xf32>
    %80 = vector.broadcast %79 : vector<1x1xf32> to vector<1x256xf32>
    %81 = arith.addf %78, %80 : vector<1x256xf32>
    %c0_44 = arith.constant 0 : index
    %c0_45 = arith.constant 0 : index
    %82 = vector.load %arg15[%c0_44, %c0_45] : memref<1x256xf32, #tpu.memory_space<vmem>>, vector<1x256xf32>
    tpu.vector_store %arg15[%c0_44, %c0_45], %81 {strides = array<i32>} : memref<1x256xf32, #tpu.memory_space<vmem>>, vector<1x256xf32>,
    return
  }
  func.func @transform_0(%arg0: i32) -> (i32, i32) {
    %c0_i32 = arith.constant 0 : i32
    %c0_i32_0 = arith.constant 0 : i32
    return %c0_i32, %arg0 : i32, i32
  }
  func.func @transform_1(%arg0: i32) -> (i32, i32) {
    %c0_i32 = arith.constant 0 : i32
    %c0_i32_0 = arith.constant 0 : i32
    return %c0_i32, %arg0 : i32, i32
  }
  func.func @transform_2(%arg0: i32) -> (i32, i32) {
    %c0_i32 = arith.constant 0 : i32
    %c0_i32_0 = arith.constant 0 : i32
    %c0_i32_1 = arith.constant 0 : i32
    return %c0_i32, %c0_i32_0 : i32, i32
  }
  func.func @transform_3(%arg0: i32) -> (i32, i32) {
    %c0_i32 = arith.constant 0 : i32
    %c0_i32_0 = arith.constant 0 : i32
    %c0_i32_1 = arith.constant 0 : i32
    return %c0_i32, %c0_i32_0 : i32, i32
  }
  func.func @transform_4(%arg0: i32) -> (i32, i32) {
    %c0_i32 = arith.constant 0 : i32
    %c0_i32_0 = arith.constant 0 : i32
    %c0_i32_1 = arith.constant 0 : i32
    return %c0_i32, %c0_i32_0 : i32, i32
  }
  func.func @transform_5(%arg0: i32) -> (i32, i32) {
    %c0_i32 = arith.constant 0 : i32
    %c0_i32_0 = arith.constant 0 : i32
    %c0_i32_1 = arith.constant 0 : i32
    return %c0_i32, %c0_i32_0 : i32, i32
  }
  func.func @transform_6(%arg0: i32) -> (i32, i32) {
    %c0_i32 = arith.constant 0 : i32
    %c0_i32_0 = arith.constant 0 : i32
    %c0_i32_1 = arith.constant 0 : i32
    return %c0_i32, %c0_i32_0 : i32, i32
  }
  func.func @transform_7(%arg0: i32) -> (i32, i32) {
    %c0_i32 = arith.constant 0 : i32
    %c0_i32_0 = arith.constant 0 : i32
    %c0_i32_1 = arith.constant 0 : i32
    return %c0_i32, %c0_i32_0 : i32, i32
  }
  func.func @transform_8(%arg0: i32) -> (i32, i32) {
    %c0_i32 = arith.constant 0 : i32
    %c0_i32_0 = arith.constant 0 : i32
    %c0_i32_1 = arith.constant 0 : i32
    return %c0_i32, %c0_i32_0 : i32, i32
  }
  func.func @transform_9(%arg0: i32) -> (i32, i32) {
    %c0_i32 = arith.constant 0 : i32
    %c0_i32_0 = arith.constant 0 : i32
    %c0_i32_1 = arith.constant 0 : i32
    return %c0_i32, %c0_i32_0 : i32, i32
  }
  func.func @transform_10(%arg0: i32) -> (i32, i32) {
    %c0_i32 = arith.constant 0 : i32
    %c0_i32_0 = arith.constant 0 : i32
    %c0_i32_1 = arith.constant 0 : i32
    return %c0_i32, %c0_i32_0 : i32, i32
  }
  func.func @transform_11(%arg0: i32) -> (i32, i32) {
    %c0_i32 = arith.constant 0 : i32
    %c0_i32_0 = arith.constant 0 : i32
    %c0_i32_1 = arith.constant 0 : i32
    return %c0_i32, %c0_i32_0 : i32, i32
  }
  func.func @transform_12(%arg0: i32) -> (i32, i32) {
    %c0_i32 = arith.constant 0 : i32
    %c0_i32_0 = arith.constant 0 : i32
    %c0_i32_1 = arith.constant 0 : i32
    return %c0_i32, %c0_i32_0 : i32, i32
  }
  func.func @transform_13(%arg0: i32) -> (i32, i32) {
    %c0_i32 = arith.constant 0 : i32
    %c0_i32_0 = arith.constant 0 : i32
    %c0_i32_1 = arith.constant 0 : i32
    return %c0_i32, %c0_i32_0 : i32, i32
  }
  func.func @transform_14(%arg0: i32) -> (i32, i32) {
    %c0_i32 = arith.constant 0 : i32
    %c0_i32_0 = arith.constant 0 : i32
    return %c0_i32, %arg0 : i32, i32
  }
}

</mosaic_0001>

<bundles_post_ra>
// kernel: serial_masknet.1
= control target key start
LH: loop header
LB: loop body
LE: loop exit
PB: predicated region body
PF: predicated region fallthrough
CT: control target
= control target key end

     0   :  { %s2036_s0 = inlined_call_operand.vmem [shape: f32[32,512], index: 0, kind: input, shape index: {}]   ;;  %s2037_s1 = inlined_call_operand.vmem [shape: f32[32,512], index: 1, kind: input, shape index: {}]   ;;  %s2038_s2 = inlined_call_operand.vmem [shape: bf16[64,32], index: 2, kind: input, shape index: {}]   ;;  %s2039_s3 = inlined_call_operand.vmem [shape: f32[64,1], index: 3, kind: input, shape index: {}]   ;;  %s2040_s4 = inlined_call_operand.vmem [shape: bf16[64,64], index: 4, kind: input, shape index: {}]   ;;  %s2041_s5 = inlined_call_operand.vmem [shape: f32[64,1], index: 5, kind: input, shape index: {}]   ;;  %s2042_s6 = inlined_call_operand.vmem [shape: bf16[32,32], index: 6, kind: input, shape index: {}]   ;;  %s2043_s7 = inlined_call_operand.vmem [shape: f32[32,1], index: 7, kind: input, shape index: {}]   ;;  %s2044_s8 = inlined_call_operand.vmem [shape: f32[32,1], index: 8, kind: input, shape index: {}]   ;;  %s2045_s9 = inlined_call_operand.vmem [shape: bf16[16,32], index: 9, kind: input, shape index: {}]   ;;  %s2046_s10 = inlined_call_operand.vmem [shape: f32[16,1], index: 10, kind: input, shape index: {}]   ;;  %s2047_s11 = inlined_call_operand.vmem [shape: f32[16,1], index: 11, kind: input, shape index: {}]   ;;  %s2048_s12 = inlined_call_operand.vmem [shape: f32[16,1], index: 12, kind: input, shape index: {}]   ;;  %s2049_s13 = inlined_call_operand.<no memory space> [shape: f32[1,1], index: 13, kind: input, shape index: {}]   ;;  %s2050_s14 = inlined_call_operand.hbm [shape: f32[1,512], index: 14, kind: output, shape index: {}]  }
   0x1   :  { %2053 = sst [smem:[#allocation8_spill]] %s2036_s0  ;;  %v19_v0 = vstv %s2049_s13 }
   0x2   :  { %2054 = sst [smem:[#allocation9_spill]] %s2037_s1  ;;  %20 = vst [vmem:[#allocation2] sm:$0x1] %v19_v0 }
   0x3   :  { %2055 = sst [smem:[#allocation10_spill]] %s2038_s2 }
   0x4   :  { %21 = vsyncpa [#allocation6], 0 }
   0x5   :  { %23 = vsyncpa [#allocation6 + $0x1], 0  ;;  %s1717_s15 = smov 0   ;;  %s1719_s16 = smov 0  }
   0x6   :  { %s1721_s17 = smov 0   ;;  %s1723_s18 = smov 0  }
   0x7 LB: > { %s2051_s13 = sadd.s32 4294967295, %s1634_s18   ;;  %s1467_s19 = sadd.s32 4294967294, %s1634_s18   ;;  %s1634_s18 = sphi %s1723_s18, %s2067_s18   ;;  %s1630_s17 = sphi %s1721_s17, %s2066_s17   ;;  %s1626_s16 = sphi %s1719_s16, %s2065_s16   ;;  %s1622_s15 = sphi %s1717_s15, %s2064_s15  }
   0x8   : > { %s1740_s20 = sadd.s32 1, %s1634_s18   ;;  %s36_s21 = sadd.s32 1, %s1630_s17 }
   0x9   : > { %s33_s22 = ssub.s32 %s1634_s18, %s1740_s20  ;;  %p43_p0 = scmp.ne.s32.totalorder %s1630_s17, %s1626_s16 }
   0xa   : > { %p34_p1 = scmp.eq.s32.totalorder %s33_s22, 0  ;;  %p44_p2 = scmp.eq.s32.totalorder %s1634_s18, 0 }
   0xb   : > { %p351_p3 = scmp.eq.s32.totalorder %s2051_s13, 1  ;;  %p356_p4 = scmp.ne.s32.totalorder %s1626_s16, %s1622_s15 }
   0xc   : > { %s1753_s23 = scalar_select %p34_p1, %s1630_s17, %s36_s21  }
   0xd   : > { %p1755_p5 = por %p44_p2, %p43_p0  ;;  %p1759_p6 = por %p351_p3, %p43_p0 }
   0xe   : > { %p357_p7 = scmp.eq.s32.totalorder %s1467_s19, 1  ;;  %p1469_p9 = scmp.ge.s32.totalorder %s1634_s18, 2 }
  0x10   : > { %p1763_p8 = por %p357_p7, %p356_p4  ;;  %409 = sbr.rel (%p1469_p9) target bundleno = 51 (0x33), region = 64 }
  0x17   : > { %412 = sbr.rel (!%p1755_p5) target bundleno = 37 (0x25), region = 68  ;;  %s414_s27 = sand.u32 (%p1755_p5), 1, %s1630_s17  }
  0x18   : > { %s1507_s28 = sshll.u32 (%p1755_p5), %s1634_s18, 4  ;;  %s1470_s29 = sshll.u32 (%p1755_p5), %s414_s27, 6 }
  0x19   : > { %s2059_s0 = sld [smem:[#allocation8_spill]] (%p1755_p5)  ;;  %s416_s22 = scalar_lea.vmem (%p1755_p5), [#allocation3], %s1470_s29 }
  0x1f   : > { %s419_s19 = scalar_lea.vmem %s2059_s0, %s1507_s28 }
  0x20   : > { %v432_v1 = vld [vmem:[%s419_s19] sm:$0xff]  ;;  %v434_v2 = vld [vmem:[%s419_s19 + $0x8] sm:$0xff] }
  0x21   : > { %v436_v3 = vld [vmem:[%s419_s19 + $0x20] sm:$0xff]  ;;  %433 = vst [vmem:[%s416_s22] sm:$0xff] %v432_v1  ;;  %435 = vst [vmem:[%s416_s22 + $0x8] sm:$0xff] %v434_v2  ;;  %v438_v4 = vld [vmem:[%s419_s19 + $0x28] sm:$0xff] }
  0x22   : > { %437 = vst [vmem:[%s416_s22 + $0x10] sm:$0xff] %v436_v3  ;;  %v440_v5 = vld [vmem:[%s419_s19 + $0x40] sm:$0xff]  ;;  %v442_v6 = vld [vmem:[%s419_s19 + $0x48] sm:$0xff]  ;;  %439 = vst [vmem:[%s416_s22 + $0x18] sm:$0xff] %v438_v4 }
  0x23   : > { %441 = vst [vmem:[%s416_s22 + $0x20] sm:$0xff] %v440_v5  ;;  %443 = vst [vmem:[%s416_s22 + $0x28] sm:$0xff] %v442_v6  ;;  %v444_v7 = vld [vmem:[%s419_s19 + $0x60] sm:$0xff]  ;;  %v446_v8 = vld [vmem:[%s419_s19 + $0x68] sm:$0xff] }
  0x24   : > { %445 = vst [vmem:[%s416_s22 + $0x30] sm:$0xff] %v444_v7  ;;  %447 = vst [vmem:[%s416_s22 + $0x38] sm:$0xff] %v446_v8 }
  0x25 PF: > { %453 = sbr.rel (!%p1755_p5) target bundleno = 51 (0x33), region = 91  ;;  %s455_s27 = sand.u32 (%p1755_p5), 1, %s1630_s17  }
  0x26   : > { %s1508_s28 = sshll.u32 (%p1755_p5), %s1634_s18, 4  ;;  %s1473_s29 = sshll.u32 (%p1755_p5), %s455_s27, 6 }
  0x27   : > { %s2060_s1 = sld [smem:[#allocation9_spill]] (%p1755_p5)  ;;  %s457_s0 = scalar_lea.vmem (%p1755_p5), [#allocation4], %s1473_s29 }
  0x2d   : > { %s460_s13 = scalar_lea.vmem %s2060_s1, %s1508_s28 }
  0x2e   : > { %v473_v9 = vld [vmem:[%s460_s13] sm:$0xff]  ;;  %v475_v10 = vld [vmem:[%s460_s13 + $0x8] sm:$0xff] }
  0x2f   : > { %v477_v11 = vld [vmem:[%s460_s13 + $0x20] sm:$0xff]  ;;  %474 = vst [vmem:[%s457_s0] sm:$0xff] %v473_v9  ;;  %476 = vst [vmem:[%s457_s0 + $0x8] sm:$0xff] %v475_v10  ;;  %v479_v12 = vld [vmem:[%s460_s13 + $0x28] sm:$0xff] }
  0x30   : > { %478 = vst [vmem:[%s457_s0 + $0x10] sm:$0xff] %v477_v11  ;;  %v481_v13 = vld [vmem:[%s460_s13 + $0x40] sm:$0xff]  ;;  %v483_v14 = vld [vmem:[%s460_s13 + $0x48] sm:$0xff]  ;;  %480 = vst [vmem:[%s457_s0 + $0x18] sm:$0xff] %v479_v12 }
  0x31   : > { %482 = vst [vmem:[%s457_s0 + $0x20] sm:$0xff] %v481_v13  ;;  %484 = vst [vmem:[%s457_s0 + $0x28] sm:$0xff] %v483_v14  ;;  %v485_v15 = vld [vmem:[%s460_s13 + $0x60] sm:$0xff]  ;;  %v487_v16 = vld [vmem:[%s460_s13 + $0x68] sm:$0xff] }
  0x32   : > { %486 = vst [vmem:[%s457_s0 + $0x30] sm:$0xff] %v485_v15  ;;  %488 = vst [vmem:[%s457_s0 + $0x38] sm:$0xff] %v487_v16 }
  0x33 PF: > { %p1476_p10 = scmp.ge.s32.totalorder %s1634_s18, 1  ;;  %p493_p11 = scmp.lt.s32.totalorder %s1634_s18, 3 }
  0x35   : > { %p494_p12 = pnand %p1476_p10, %p493_p11 }
  0x36   : > { %s1787_s24 = sand.u32 (!%p494_p12), 1, %s1626_s16   ;;  %v1636_v17 = vmov (!%p494_p12), 0   ;;  %v580_v30 = vld [vmem:[%s2039_s3] sm:$0xff] (!%p494_p12)  ;;  %v582_v31 = vld [vmem:[%s2039_s3 + $0x10] sm:$0xff] (!%p494_p12)  ;;  %v581_v32 = vld [vmem:[%s2039_s3 + $0x8] sm:$0xff] (!%p494_p12)  ;;  %s2061_s2 = sld [smem:[#allocation10_spill]] (!%p494_p12) }
  0x37   : > { %497 = sbr.rel (%p494_p12) target bundleno = 1156 (0x484), region = 114  ;;  %s2052_s19 = sshll.u32 (!%p494_p12), %s1787_s24, 6  ;;  %693 = vmatprep.mubr.bf16.mxu0 (!%p494_p12), %v1636_v17  ;;  %1551 = vset.pattern.permute.xlu0 (!%p494_p12), %v1636_v17  ;;  %v583_v34 = vld [vmem:[%s2039_s3 + $0x18] sm:$0xff] (!%p494_p12)  ;;  %vm648_vm0 = vcmask (!%p494_p12), 261120   ;;  %v584_v35 = vld [vmem:[%s2039_s3 + $0x20] sm:$0xff] (!%p494_p12)  ;;  %v585_v36 = vld [vmem:[%s2039_s3 + $0x28] sm:$0xff] (!%p494_p12) }
  0x38   : > { %1552 = vset.pattern.permute.xlu1 (!%p494_p12), %v1636_v17  ;;  %879 = vmatprep.mubr.bf16.mxu1 (!%p494_p12), %v1636_v17  ;;  %s502_s0 = scalar_lea.vmem (!%p494_p12), [#allocation3], %s2052_s19  ;;  %v586_v38 = vld [vmem:[%s2039_s3 + $0x30] sm:$0xff] (!%p494_p12)  ;;  %v587_v39 = vld [vmem:[%s2039_s3 + $0x38] sm:$0xff] (!%p494_p12)  ;;  %v766_v40 = vld [vmem:[%s2041_s5] sm:$0xff] (!%p494_p12)  ;;  %vm834_vm1 = vcmask (!%p494_p12), 523264   ;;  %s2062_s1 = sshll.u32 (!%p494_p12), %s1787_s24, 6 }
  0x39   : > { %v561_v18 = vld [vmem:[%s502_s0 + $0x8] sm:$0xff] (!%p494_p12)  ;;  %v563_v19 = vld [vmem:[%s502_s0 + $0x18] sm:$0xff] (!%p494_p12)  ;;  %v560_v20 = vld [vmem:[%s502_s0] sm:$0xff] (!%p494_p12)  ;;  %590 = vperm.xlu0 (!%p494_p12), %1551, %v580_v30   ;;  %600 = vperm.xlu1 (!%p494_p12), %1552, %v582_v31   ;;  %s1924_s19 = scalar_lea.vmem (!%p494_p12), [#allocation4], %s2062_s1  ;;  %s1479_s29 = sshll.u32 (!%p494_p12), %s1787_s24, 1 }
  0x3a   : > { %v569_v21 = vpack.c.bf16 (!%p494_p12), %v563_v19, %v561_v18  ;;  %v562_v22 = vld [vmem:[%s502_s0 + $0x10] sm:$0xff] (!%p494_p12)  ;;  %v565_v23 = vld [vmem:[%s502_s0 + $0x28] sm:$0xff] (!%p494_p12)  ;;  %v567_v24 = vld [vmem:[%s502_s0 + $0x38] sm:$0xff] (!%p494_p12)  ;;  %s2063_s30 = sadd.s32 (!%p494_p12), 4294967295, %s1634_s18   ;;  %s1370_s27 = scalar_lea.sflag (!%p494_p12), [#allocation6], %s1787_s24 }
  0x3b   : > { %v568_v25 = vpack.c.bf16 (!%p494_p12), %v562_v22, %v560_v20  ;;  %v571_v26 = vpack.c.bf16 (!%p494_p12), %v567_v24, %v565_v23  ;;  %v564_v27 = vld [vmem:[%s502_s0 + $0x20] sm:$0xff] (!%p494_p12)  ;;  %v566_v28 = vld [vmem:[%s502_s0 + $0x30] sm:$0xff] (!%p494_p12)  ;;  %v1334_v0 = vld [vmem:[#allocation2] sm:$0x1] (!%p494_p12)  ;;  %s1509_s1 = sshll.u32 (!%p494_p12), %s2063_s30, 5 }
  0x3c   : > { %661 = vmatprep.subr.bf16.mxu0 (!%p494_p12), %v569_v21  ;;  %v570_v29 = vpack.c.bf16 (!%p494_p12), %v566_v28, %v564_v27  ;;  %v1553_v33 = vld [vmem:[%s2061_s2] sm:$0xff] (!%p494_p12)   ;;  %v1554_v37 = vld [vmem:[%s2061_s2 + $0x8] sm:$0xff] (!%p494_p12)   ;;  %v768_v42 = vld [vmem:[%s2041_s5 + $0x10] sm:$0xff] (!%p494_p12)  ;;  %s1992_s22 = scalar_lea.hbm (!%p494_p12), %s2050_s14, %s1509_s1 }
  0x3d   : > { %662 = vmatpush1.bf16.msra.mxu0 (!%p494_p12), %v568_v25  ;;  %595 = vperm.xlu0 (!%p494_p12), %1551, %v581_v32   ;;  %v767_v41 = vld [vmem:[%s2041_s5 + $0x8] sm:$0xff] (!%p494_p12)  ;;  %v1555_v43 = vld [vmem:[%s2061_s2 + $0x10] sm:$0xff] (!%p494_p12)   ;;  %v769_v44 = vld [vmem:[%s2041_s5 + $0x18] sm:$0xff] (!%p494_p12) }
  0x3e   : > { %663 = vmatprep.subr.bf16.mxu0 %v571_v26  ;;  %605 = vperm.xlu1 %1552, %v583_v34   ;;  %v1082_v45 = vld [vmem:[%s2043_s7] sm:$0xff]  ;;  %v1083_v46 = vld [vmem:[%s2043_s7 + $0x8] sm:$0xff]  ;;  %v1556_v48 = vld [vmem:[%s2061_s2 + $0x18] sm:$0xff]  }
  0x3f   : > { %v1114_v47 = vld [vmem:[%s2044_s8] sm:$0xff]  ;;  %v1115_v49 = vld [vmem:[%s2044_s8 + $0x8] sm:$0xff]  ;;  %v1084_v52 = vld [vmem:[%s2043_s7 + $0x10] sm:$0xff] }
  0x40   : > { %v770_v50 = vld [vmem:[%s2041_s5 + $0x20] sm:$0xff]  ;;  %v771_v51 = vld [vmem:[%s2041_s5 + $0x28] sm:$0xff]  ;;  %v1085_v53 = vld [vmem:[%s2043_s7 + $0x18] sm:$0xff] }
  0x41   : > { %664 = vmatpush1.bf16.msra.mxu0 %v570_v29  ;;  %610 = vperm.xlu0 %1551, %v584_v35   ;;  %v1116_v54 = vld [vmem:[%s2044_s8 + $0x10] sm:$0xff]  ;;  %v1117_v55 = vld [vmem:[%s2044_s8 + $0x18] sm:$0xff]  ;;  %v1268_v58 = vld [vmem:[%s2046_s10] sm:$0xff] }
  0x42   : > { %615 = vperm.xlu1 %1552, %v585_v36   ;;  %v772_v56 = vld [vmem:[%s2041_s5 + $0x30] sm:$0xff]  ;;  %v773_v57 = vld [vmem:[%s2041_s5 + $0x38] sm:$0xff]  ;;  %v1269_v59 = vld [vmem:[%s2046_s10 + $0x8] sm:$0xff] }
  0x43   : > { %v1284_v60 = vld [vmem:[%s2047_s11] sm:$0xff]  ;;  %v1285_v61 = vld [vmem:[%s2047_s11 + $0x8] sm:$0xff] }
  0x44   : > { %1484 = vmatmul.mubr.msk.bf16.vlgmr.msra.gmra.mrb[0].mxu0 %vm648_vm0, %v1553_v33  ;;  %v1304_v62 = vld [vmem:[%s2048_s12] sm:$0xff]  ;;  %v1305_v63 = vld [vmem:[%s2048_s12 + $0x8] sm:$0xff] }
  0x45   : > { %703 = vmatprep.mubr.bf16.mxu0 %v1636_v17  ;;  %620 = vperm.xlu0 %1551, %v586_v38  }
  0x46   : > { %625 = vperm.xlu1 %1552, %v587_v39  }
  0x49   : > { %776 = vperm.xlu0 %1551, %v766_v40  }
  0x4a   : > { %781 = vperm.xlu1 %1552, %v767_v41  }
  0x4c   : > { %1485 = vmatmul.mubr.msk.bf16.gmra.mrb[4].mxu0 %vm648_vm0, %v1554_v37 }
  0x4d   : > { %713 = vmatprep.mubr.bf16.mxu0 %v1636_v17  ;;  %786 = vperm.xlu0 %1551, %v768_v42  }
  0x4e   : > { %791 = vperm.xlu1 %1552, %v769_v44  }
  0x51   : > { %1088 = vperm.xlu0 %1551, %v1082_v45  }
  0x52   : > { %1093 = vperm.xlu1 %1552, %v1083_v46  }
  0x54   : > { %1486 = vmatmul.mubr.msk.bf16.gmra.mrb[8].mxu0 %vm648_vm0, %v1555_v43 }
  0x55   : > { %723 = vmatprep.mubr.bf16.mxu0 %v1636_v17  ;;  %1120 = vperm.xlu0 %1551, %v1114_v47  }
  0x56   : > { %1125 = vperm.xlu1 %1552, %v1115_v49  }
  0x59   : > { %796 = vperm.xlu0 %1551, %v770_v50  }
  0x5a   : > { %801 = vperm.xlu1 %1552, %v771_v51  }
  0x5c   : > { %1487 = vmatmul.mubr.msk.bf16.gmra.mrb[12].mxu0 %vm648_vm0, %v1556_v48 }
  0x5d   : > { %992 = vmatprep.mubr.bf16.mxu0 %v1636_v17  ;;  %1098 = vperm.xlu0 %1551, %v1084_v52  }
  0x5e   : > { %1103 = vperm.xlu1 %1552, %v1085_v53  }
  0x61   : > { %1130 = vperm.xlu0 %1551, %v1116_v54  }
  0x62   : > { %1135 = vperm.xlu1 %1552, %v1117_v55  }
  0x65   : > { %806 = vperm.xlu0 %1551, %v772_v56  }
  0x66   : > { %811 = vperm.xlu1 %1552, %v773_v57  }
  0x69   : > { %1272 = vperm.xlu0 %1551, %v1268_v58  }
  0x6a   : > { %1277 = vperm.xlu1 %1552, %v1269_v59  }
  0x6d   : > { %1288 = vperm.xlu0 %1551, %v1284_v60  }
  0x6e   : > { %1293 = vperm.xlu1 %1552, %v1285_v61  }
  0x71   : > { %1308 = vperm.xlu0 %1551, %v1304_v62  }
  0x72   : > { %1313 = vperm.xlu1 %1552, %v1305_v63  }
  0x75   : > { %1337 = vperm.xlu0 %1551, %v1334_v0  }
  0xb8   : > { %v591_v1 = vpop.permute.xlu0 %590  ;;  %v601_v10 = vpop.permute.xlu1 %600 }
  0xbc   : > { %v596_v5 = vpop.permute.xlu0 %595 }
  0xbd   : > { %v606_v22 = vpop.permute.xlu1 %605 }
  0xc0   : > { %v611_v33 = vpop.permute.xlu0 %610 }
  0xc1   : > { %v616_v38 = vpop.permute.xlu1 %615 }
  0xc4   : > { %v621_v49 = vpop.permute.xlu0 %620 }
  0xc5   : > { %v626_v54 = vpop.permute.xlu1 %625 }
 0x117   : > { %v695_v2 = vpop.f32.mrb[0].mxu0 }
 0x118   : > { %v696_v3 = vadd.f32 %v695_v2, %v591_v1  ;;  %v697_v4 = vpop.f32.mrb[1].mxu0  ;;  %v1557_v2 = vld [vmem:[%s2040_s4] sm:$0xff]  }
 0x119   : > { %v698_v6 = vadd.f32 %v697_v4, %v591_v1  ;;  %v699_v7 = vpop.f32.mrb[2].mxu0  ;;  %v1559_v4 = vld [vmem:[%s2040_s4 + $0x10] sm:$0xff]  }
 0x11a   : > { %v700_v8 = vadd.f32 %v699_v7, %v596_v5  ;;  %v701_v9 = vpop.f32.mrb[3].mxu0  ;;  %v734_v12 = vmax.f32 %v696_v3, 0.0  ;;  %v1558_v3 = vld [vmem:[%s2040_s4 + $0x8] sm:$0xff]  }
 0x11b   : > { %v702_v11 = vadd.f32 %v701_v9, %v596_v5  ;;  %v735_v14 = vmax.f32 %v698_v6, 0.0  ;;  %v1560_v5 = vld [vmem:[%s2040_s4 + $0x18] sm:$0xff]   ;;  %v777_v6 = vpop.permute.xlu0 %776 }
 0x11c   : > { %v736_v13 = vmax.f32 %v700_v8, 0.0  ;;  %v920_v8 = vld [vmem:[%s1924_s19] sm:$0xff] }
 0x11d   : > { %v737_v15 = vmax.f32 %v702_v11, 0.0  ;;  %v921_v11 = vld [vmem:[%s1924_s19 + $0x8] sm:$0xff] }
 0x11e   : > { %v758_v16 = vpack.c.bf16 %v736_v13, %v734_v12  ;;  %v782_v12 = vpop.permute.xlu1 %781 }
 0x11f   : > { %v705_v18 = vpop.f32.mrb[4].mxu0  ;;  %v759_v19 = vpack.c.bf16 %v737_v15, %v735_v14  ;;  %v922_v15 = vld [vmem:[%s1924_s19 + $0x10] sm:$0xff] }
 0x120   : > { %v706_v20 = vadd.f32 %v705_v18, %v601_v10  ;;  %v707_v21 = vpop.f32.mrb[5].mxu0 }
 0x121   : > { %v708_v23 = vadd.f32 %v707_v21, %v601_v10  ;;  %v709_v24 = vpop.f32.mrb[6].mxu0  ;;  %847 = vmatprep.subr.bf16.mxu1 %v759_v19 }
 0x122   : > { %v710_v25 = vadd.f32 %v709_v24, %v606_v22  ;;  %v711_v26 = vpop.f32.mrb[7].mxu0  ;;  %848 = vmatpush1.bf16.msra.mxu1 %v758_v16  ;;  %v738_v28 = vmax.f32 %v706_v20, 0.0  ;;  %v923_v20 = vld [vmem:[%s1924_s19 + $0x18] sm:$0xff] }
 0x123   : > { %v712_v27 = vadd.f32 %v711_v26, %v606_v22  ;;  %v739_v30 = vmax.f32 %v708_v23, 0.0  ;;  %v787_v26 = vpop.permute.xlu0 %786 }
 0x124   : > { %v740_v29 = vmax.f32 %v710_v25, 0.0 }
 0x125   : > { %v741_v31 = vmax.f32 %v712_v27, 0.0 }
 0x126   : > { %v760_v32 = vpack.c.bf16 %v740_v29, %v738_v28  ;;  %v924_v28 = vld [vmem:[%s1924_s19 + $0x20] sm:$0xff] }
 0x127   : > { %v761_v34 = vpack.c.bf16 %v741_v31, %v739_v30  ;;  %v715_v35 = vpop.f32.mrb[8].mxu0 }
 0x128   : > { %v716_v36 = vadd.f32 %v715_v35, %v611_v33  ;;  %v717_v37 = vpop.f32.mrb[9].mxu0 }
 0x129   : > { %v718_v39 = vadd.f32 %v717_v37, %v611_v33  ;;  %v719_v40 = vpop.f32.mrb[10].mxu0  ;;  %849 = vmatprep.subr.bf16.mxu1 %v761_v34  ;;  %v792_v33 = vpop.permute.xlu1 %791 }
 0x12a   : > { %v720_v41 = vadd.f32 %v719_v40, %v616_v38  ;;  %v721_v42 = vpop.f32.mrb[11].mxu0  ;;  %850 = vmatpush1.bf16.msra.mxu1 %v760_v32  ;;  %v742_v44 = vmax.f32 %v716_v36, 0.0  ;;  %v925_v32 = vld [vmem:[%s1924_s19 + $0x28] sm:$0xff]  ;;  %v926_v36 = vld [vmem:[%s1924_s19 + $0x30] sm:$0xff]  ;;  %v927_v40 = vld [vmem:[%s1924_s19 + $0x38] sm:$0xff]  ;;  %s555_s19 = scalar_lea.vmem [#allocation5], %s1479_s29 }
 0x12b   : > { %v722_v43 = vadd.f32 %v721_v42, %v616_v38  ;;  %v743_v46 = vmax.f32 %v718_v39, 0.0  ;;  %s1384_s21 = sshll.u32 %s555_s19, 4  ;;  %s1638_s29 = smov [#allocation5]   ;;  %s1994_s21 = int_to_ptr.vmem [resolvable:$true] %s1384_s21 }
 0x12c   : > { %v744_v45 = vmax.f32 %v720_v41, 0.0  ;;  %s1572_s28 = scalar_lea.vmem %s1994_s21, 32  ;;  %s1576_s30 = sshll.u32 %s1638_s29, 4  ;;  %s1577_s30 = int_to_ptr.vmem [resolvable:$false] %s1576_s30 }
 0x12d   : > { %v745_v47 = vmax.f32 %v722_v43, 0.0  ;;  %p1573_p13 = scmp.ne.s32.totalorder %s1994_s21, %s1572_s28  ;;  %s1578_s2 = scalar_lea.vmem %s1577_s30, 64 }
 0x12e   : > { %v762_v48 = vpack.c.bf16 %v744_v45, %v742_v44  ;;  %p1579_p2 = scmp.lt.s32.totalorder %s1994_s21, %s1577_s30  ;;  %p1580_p3 = scmp.lt.s32.totalorder %s1578_s2, %s1572_s28 }
 0x12f   : > { %v763_v50 = vpack.c.bf16 %v745_v47, %v743_v46  ;;  %v725_v51 = vpop.f32.mrb[12].mxu0  ;;  %p1574_p0 = pnand %p1573_p13, %p1759_p6 }
 0x130   : > { %v726_v52 = vadd.f32 %v725_v51, %v621_v49  ;;  %v727_v53 = vpop.f32.mrb[13].mxu0  ;;  %p1581_p4 = por %p1580_p3, %p1579_p2 }
 0x131   : > { %v728_v55 = vadd.f32 %v727_v53, %v621_v49  ;;  %v729_v56 = vpop.f32.mrb[14].mxu0  ;;  %851 = vmatprep.subr.bf16.mxu1 %v763_v50  ;;  %v1561_v50 = vld [vmem:[%s2042_s6] sm:$0xff]   ;;  %p1575_p1 = pneg %p1574_p0 }
 0x132   : > { %v730_v57 = vadd.f32 %v729_v56, %v626_v54  ;;  %v731_v58 = vpop.f32.mrb[15].mxu0  ;;  %852 = vmatpush1.bf16.msra.mxu1 %v762_v48  ;;  %v746_v60 = vmax.f32 %v726_v52, 0.0 }
 0x133   : > { %v732_v59 = vadd.f32 %v731_v58, %v626_v54  ;;  %v747_v62 = vmax.f32 %v728_v55, 0.0  ;;  %v1562_v55 = vld [vmem:[%s2042_s6 + $0x8] sm:$0xff]   ;;  %p1582_p5 = pnand %p1581_p4, %p1575_p1 }
 0x134   : > { %v748_v61 = vmax.f32 %v730_v57, 0.0 }
 0x135   : > { %v749_v63 = vmax.f32 %v732_v59, 0.0 }
 0x136   : > { %v764_v0 = vpack.c.bf16 %v748_v61, %v746_v60 }
 0x137   : > { %v765_v1 = vpack.c.bf16 %v749_v63, %v747_v62 }
 0x139   : > { %853 = vmatprep.subr.bf16.mxu1 %v765_v1 }
 0x13a   : > { %854 = vmatpush1.bf16.msra.mxu1 %v764_v0 }
 0x13d   : > { %1492 = vmatmul.mubr.msk.bf16.vlgmr.msra.gmra.mrb[0].mxu1 %vm834_vm1, %v1557_v2 }
 0x13e   : > { %889 = vmatprep.mubr.bf16.mxu1 %v1636_v17 }
 0x145   : > { %1493 = vmatmul.mubr.msk.bf16.gmra.mrb[4].mxu1 %vm834_vm1, %v1558_v3 }
 0x146   : > { %899 = vmatprep.mubr.bf16.mxu1 %v1636_v17 }
 0x14d   : > { %1494 = vmatmul.mubr.msk.bf16.gmra.mrb[8].mxu1 %vm834_vm1, %v1559_v4 }
 0x14e   : > { %909 = vmatprep.mubr.bf16.mxu1 %v1636_v17 }
 0x155   : > { %1495 = vmatmul.mubr.msk.bf16.gmra.mrb[12].mxu1 %vm834_vm1, %v1560_v5 }
 0x156   : > { %1208 = vmatprep.mubr.bf16.mxu1 %v1636_v17 }
 0x210   : > { %v881_v7 = vpop.f32.mrb[0].mxu1 }
 0x211   : > { %v882_v9 = vadd.f32 %v881_v7, %v777_v6  ;;  %v883_v10 = vpop.f32.mrb[1].mxu1 }
 0x212   : > { %v884_v13 = vadd.f32 %v883_v10, %v777_v6  ;;  %v885_v14 = vpop.f32.mrb[2].mxu1 }
 0x213   : > { %v928_v16 = vmul.f32 %v920_v8, %v882_v9  ;;  %v886_v18 = vadd.f32 %v885_v14, %v782_v12  ;;  %v887_v19 = vpop.f32.mrb[3].mxu1 }
 0x214   : > { %v929_v21 = vmul.f32 %v921_v11, %v884_v13  ;;  %v888_v22 = vadd.f32 %v887_v19, %v782_v12 }
 0x215   : > { %v930_v23 = vmul.f32 %v922_v15, %v886_v18 }
 0x216   : > { %v931_v24 = vmul.f32 %v923_v20, %v888_v22 }
 0x217   : > { %v940_v25 = vpack.c.bf16 %v930_v23, %v928_v16 }
 0x218   : > { %v891_v27 = vpop.f32.mrb[4].mxu1  ;;  %v941_v29 = vpack.c.bf16 %v931_v24, %v929_v21 }
 0x219   : > { %v892_v30 = vadd.f32 %v891_v27, %v787_v26  ;;  %v893_v31 = vpop.f32.mrb[5].mxu1 }
 0x21a   : > { %v894_v34 = vadd.f32 %v893_v31, %v787_v26  ;;  %v895_v35 = vpop.f32.mrb[6].mxu1  ;;  %960 = vmatprep.subr.bf16.mxu0 %v941_v29 }
 0x21b   : > { %v932_v37 = vmul.f32 %v924_v28, %v892_v30  ;;  %v896_v38 = vadd.f32 %v895_v35, %v792_v33  ;;  %v897_v39 = vpop.f32.mrb[7].mxu1  ;;  %961 = vmatpush1.bf16.msra.mxu0 %v940_v25  ;;  %v1089_v35 = vpop.permute.xlu0 %1088 }
 0x21c   : > { %v933_v41 = vmul.f32 %v925_v32, %v894_v34  ;;  %v898_v42 = vadd.f32 %v897_v39, %v792_v33 }
 0x21d   : > { %v934_v43 = vmul.f32 %v926_v36, %v896_v38  ;;  %v1094_v36 = vpop.permute.xlu1 %1093 }
 0x21e   : > { %v935_v44 = vmul.f32 %v927_v40, %v898_v42 }
 0x21f   : > { %v942_v45 = vpack.c.bf16 %v934_v43, %v932_v37 }
 0x220   : > { %v1934_v46 = vpop.f32.mrb[8].mxu1  ;;  %v943_v47 = vpack.c.bf16 %v935_v44, %v933_v41 }
 0x221   : > { %v1936_v48 = vpop.f32.mrb[9].mxu1 }
 0x222   : > { %v1938_v49 = vpop.f32.mrb[10].mxu1  ;;  %962 = vmatprep.subr.bf16.mxu0 %v943_v47  ;;  %v1121_v47 = vpop.permute.xlu0 %1120 }
 0x223   : > { %v1943_v51 = vpop.f32.mrb[11].mxu1  ;;  %963 = vmatpush1.bf16.msra.mxu0 %v942_v45 }
 0x226   : > { %1498 = vmatmul.mubr.msk.bf16.vlgmr.msra.gmra.mrb[16].mxu0 %vm648_vm0, %v1561_v50  ;;  %v1126_v50 = vpop.permute.xlu1 %1125 }
 0x227   : > { %1002 = vmatprep.mubr.bf16.mxu0 %v1636_v17 }
 0x228   : > { %v1947_v52 = vpop.f32.mrb[12].mxu1 }
 0x229   : > { %v1949_v53 = vpop.f32.mrb[13].mxu1 }
 0x22a   : > { %v1951_v54 = vpop.f32.mrb[14].mxu1 }
 0x22b   : > { %v1956_v56 = vpop.f32.mrb[15].mxu1 }
 0x22e   : > { %1499 = vmatmul.mubr.msk.bf16.gmra.mrb[20].mxu0 %vm648_vm0, %v1562_v55 }
 0x2f9   : > { %v994_v57 = vpop.f32.mrb[16].mxu0 }
 0x2fa   : > { %v996_v58 = vpop.f32.mrb[17].mxu0 }
 0x2fb   : > { %v998_v59 = vpop.f32.mrb[18].mxu0 }
 0x2fc   : > { %v1013_v60 = vadd.f32 %v998_v59, %v994_v57  ;;  %v1000_v61 = vpop.f32.mrb[19].mxu0 }
 0x2fd   : > { %v1022_v17 = vadd.f32 %v1000_v61, %v996_v58 }
 0x301   : > { %v1004_v62 = vpop.f32.mrb[20].mxu0 }
 0x302   : > { %v1014_v63 = vadd.f32 %v1013_v60, %v1004_v62  ;;  %v1006_v0 = vpop.f32.mrb[21].mxu0 }
 0x303   : > { %v1023_v1 = vadd.f32 %v1022_v17, %v1006_v0  ;;  %v1008_v2 = vpop.f32.mrb[22].mxu0  ;;  %v797_v17 = vpop.permute.xlu0 %796 }
 0x304   : > { %v1015_v3 = vadd.f32 %v1014_v63, %v1008_v2  ;;  %v1010_v4 = vpop.f32.mrb[23].mxu0 }
 0x305   : > { %v1024_v5 = vadd.f32 %v1023_v1, %v1010_v4 }
 0x306   : > { %v1016_v6 = vrot.slane %v1015_v3, 4 }
 0x307   : > { %v1025_v7 = vrot.slane %v1024_v5, 4 }
 0x308   : > { %v1017_v8 = vadd.f32 %v1016_v6, %v1015_v3 }
 0x309   : > { %v1026_v9 = vadd.f32 %v1025_v7, %v1024_v5  ;;  %v1099_v5 = vpop.permute.xlu0 %1098 }
 0x30a   : > { %v1018_v10 = vrot.slane %v1017_v8, 2 }
 0x30b   : > { %v1027_v11 = vrot.slane %v1026_v9, 2 }
 0x30c   : > { %v1019_v12 = vadd.f32 %v1018_v10, %v1017_v8 }
 0x30d   : > { %v1028_v13 = vadd.f32 %v1027_v11, %v1026_v9  ;;  %v1131_v10 = vpop.permute.xlu0 %1130 }
 0x30e   : > { %v1020_v14 = vrot.slane %v1019_v12, 1 }
 0x30f   : > { %v1029_v15 = vrot.slane %v1028_v13, 1 }
 0x310   : > { %v1021_v16 = vadd.f32 %v1020_v14, %v1019_v12  ;;  %v902_v14 = vadd.f32 %v1934_v46, %v797_v17 }
 0x311   : > { %v1030_v18 = vadd.f32 %v1029_v15, %v1028_v13  ;;  %v807_v12 = vpop.permute.xlu0 %806  ;;  %v904_v15 = vadd.f32 %v1936_v48, %v797_v17 }
 0x312   : > { %v1032_v19 = vmul.f32 0.03125, %v1021_v16 }
 0x313   : > { %v1033_v20 = vmul.f32 0.03125, %v1030_v18 }
 0x314   : > { %v1034_v21 = vsub.f32 %v994_v57, %v1032_v19  ;;  %v1036_v22 = vsub.f32 %v998_v59, %v1032_v19  ;;  %v1038_v23 = vsub.f32 %v1004_v62, %v1032_v19  ;;  %v1040_v24 = vsub.f32 %v1008_v2, %v1032_v19  ;;  %v802_v62 = vpop.permute.xlu1 %801 }
 0x315   : > { %v1959_v25 = vsub.f32 %v996_v58, %v1033_v20  ;;  %v1961_v26 = vsub.f32 %v1000_v61, %v1033_v20  ;;  %v1963_v27 = vsub.f32 %v1006_v0, %v1033_v20  ;;  %v1041_v28 = vsub.f32 %v1010_v4, %v1033_v20 }
 0x316   : > { %v1042_v29 = vmul.f32 %v1034_v21, %v1034_v21  ;;  %v1044_v30 = vmul.f32 %v1036_v22, %v1036_v22  ;;  %v1046_v33 = vmul.f32 %v1038_v23, %v1038_v23  ;;  %v1048_v39 = vmul.f32 %v1040_v24, %v1040_v24 }
 0x317   : > { %v1043_v31 = vmul.f32 %v1959_v25, %v1959_v25  ;;  %v1045_v32 = vmul.f32 %v1961_v26, %v1961_v26  ;;  %v1047_v37 = vmul.f32 %v1963_v27, %v1963_v27  ;;  %v1049_v41 = vmul.f32 %v1041_v28, %v1041_v28 }
 0x318   : > { %v1050_v34 = vadd.f32 %v1044_v30, %v1042_v29  ;;  %v1104_v6 = vpop.permute.xlu1 %1103  ;;  %v906_v16 = vadd.f32 %v1938_v49, %v802_v62  ;;  %v908_v18 = vadd.f32 %v1943_v51, %v802_v62  ;;  %v912_v20 = vadd.f32 %v1947_v52, %v807_v12 }
 0x319   : > { %v1059_v38 = vadd.f32 %v1045_v32, %v1043_v31  ;;  %v914_v29 = vadd.f32 %v1949_v53, %v807_v12 }
 0x31a   : > { %v1051_v40 = vadd.f32 %v1050_v34, %v1046_v33 }
 0x31b   : > { %v1060_v42 = vadd.f32 %v1059_v38, %v1047_v37 }
 0x31c   : > { %v1052_v43 = vadd.f32 %v1051_v40, %v1048_v39  ;;  %v1136_v11 = vpop.permute.xlu1 %1135 }
 0x31d   : > { %v1061_v44 = vadd.f32 %v1060_v42, %v1049_v41 }
 0x31e   : > { %v1053_v45 = vrot.slane %v1052_v43, 4 }
 0x31f   : > { %v1062_v55 = vrot.slane %v1061_v44, 4 }
 0x320   : > { %v1054_v57 = vadd.f32 %v1053_v45, %v1052_v43  ;;  %v812_v13 = vpop.permute.xlu1 %811 }
 0x321   : > { %v1063_v58 = vadd.f32 %v1062_v55, %v1061_v44  ;;  %v916_v30 = vadd.f32 %v1951_v54, %v812_v13  ;;  %v918_v31 = vadd.f32 %v1956_v56, %v812_v13 }
 0x322   : > { %v1055_v59 = vrot.slane %v1054_v57, 2 }
 0x323   : > { %v1064_v60 = vrot.slane %v1063_v58, 2 }
 0x324   : > { %v1056_v61 = vadd.f32 %v1055_v59, %v1054_v57 }
 0x325   : > { %v1065_v63 = vadd.f32 %v1064_v60, %v1063_v58 }
 0x326   : > { %v1057_v0 = vrot.slane %v1056_v61, 1 }
 0x327   : > { %v1066_v1 = vrot.slane %v1065_v63, 1 }
 0x328   : > { %v1058_v2 = vadd.f32 %v1057_v0, %v1056_v61 }
 0x329   : > { %v1067_v3 = vadd.f32 %v1066_v1, %v1065_v63 }
 0x32a   : > { %v1068_v4 = vmul.f32 0.03125, %v1058_v2 }
 0x32b   : > { %v1069_v7 = vmul.f32 0.03125, %v1067_v3 }
 0x32c   : > { %v1070_v8 = vadd.f32 1e-05, %v1068_v4  ;;  %v1563_v4 = vld [vmem:[%s2045_s9] sm:$0xff]  }
 0x32d   : > { %v1071_v9 = vadd.f32 1e-05, %v1069_v7 }
 0x32e   : > { %1564 = vrsqrt.f32 %v1070_v8 }
 0x32f   : > { %1566 = vrsqrt.f32 %v1071_v9 }
 0x338   : > { %v1565_v19 = vpop.eup %1564 }
 0x339   : > { %v1567_v32 = vpop.eup %1566  ;;  %v1074_v33 = vmul.f32 %v1565_v19, %v1034_v21  ;;  %v1076_v34 = vmul.f32 %v1565_v19, %v1036_v22  ;;  %v1078_v37 = vmul.f32 %v1565_v19, %v1038_v23  ;;  %v1080_v46 = vmul.f32 %v1565_v19, %v1040_v24 }
 0x33a   : > { %v1081_v38 = vmul.f32 %v1567_v32, %v1041_v28  ;;  %v1075_v48 = vmul.f32 %v1567_v32, %v1959_v25  ;;  %v1077_v49 = vmul.f32 %v1567_v32, %v1961_v26  ;;  %v1079_v51 = vmul.f32 %v1567_v32, %v1963_v27 }
 0x33b   : > { %v1112_v39 = vmul.f32 %v1104_v6, %v1080_v46  ;;  %v1106_v52 = vmul.f32 %v1089_v35, %v1074_v33  ;;  %v1108_v40 = vmul.f32 %v1094_v36, %v1076_v34  ;;  %v1110_v53 = vmul.f32 %v1099_v5, %v1078_v37 }
 0x33c   : > { %v1113_v41 = vmul.f32 %v1104_v6, %v1081_v38  ;;  %v1107_v54 = vmul.f32 %v1089_v35, %v1075_v48  ;;  %v1109_v42 = vmul.f32 %v1094_v36, %v1077_v49  ;;  %v1111_v56 = vmul.f32 %v1099_v5, %v1079_v51 }
 0x33d   : > { %v1144_v43 = vadd.f32 %v1136_v11, %v1112_v39  ;;  %v1138_v21 = vadd.f32 %v1121_v47, %v1106_v52  ;;  %v1140_v22 = vadd.f32 %v1126_v50, %v1108_v40  ;;  %v1142_v23 = vadd.f32 %v1131_v10, %v1110_v53 }
 0x33e   : > { %v1145_v24 = vadd.f32 %v1136_v11, %v1113_v41  ;;  %v1139_v28 = vadd.f32 %v1121_v47, %v1107_v54  ;;  %v1141_v44 = vadd.f32 %v1126_v50, %v1109_v42  ;;  %v1143_v25 = vadd.f32 %v1131_v10, %v1111_v56 }
 0x33f   : > { %v1152_v45 = vmax.f32 %v1144_v43, 0.0  ;;  %v1146_v26 = vmax.f32 %v1138_v21, 0.0  ;;  %v1148_v55 = vmax.f32 %v1140_v22, 0.0  ;;  %v1150_v27 = vmax.f32 %v1142_v23, 0.0 }
 0x340   : > { %v1153_v57 = vmax.f32 %v1145_v24, 0.0  ;;  %v1147_v58 = vmax.f32 %v1139_v28, 0.0  ;;  %v1149_v59 = vmax.f32 %v1141_v44, 0.0  ;;  %v1151_v60 = vmax.f32 %v1143_v25, 0.0 }
 0x341   : > { %v1154_v61 = vmul.f32 %v1146_v26, %v902_v14  ;;  %v1156_v35 = vmul.f32 %v1148_v55, %v906_v16  ;;  %v1158_v36 = vmul.f32 %v1150_v27, %v912_v20  ;;  %v1160_v17 = vmul.f32 %v1152_v45, %v916_v30  ;;  %v1273_v27 = vpop.permute.xlu0 %1272 }
 0x342   : > { %v1155_v62 = vmul.f32 %v1147_v58, %v904_v15  ;;  %v1157_v63 = vmul.f32 %v1149_v59, %v908_v18  ;;  %v1159_v0 = vmul.f32 %v1151_v60, %v914_v29  ;;  %v1161_v1 = vmul.f32 %v1153_v57, %v918_v31  ;;  %v1278_v57 = vpop.permute.xlu1 %1277 }
 0x343   : > { %v1164_v2 = vpack.c.bf16 %v1156_v35, %v1154_v61  ;;  %v1166_v47 = vpack.c.bf16 %v1160_v17, %v1158_v36 }
 0x344   : > { %v1165_v50 = vpack.c.bf16 %v1157_v63, %v1155_v62  ;;  %v1167_v3 = vpack.c.bf16 %v1161_v1, %v1159_v0 }
 0x345   : > { %v1289_v35 = vpop.permute.xlu0 %1288 }
 0x346   : > { %1176 = vmatprep.subr.bf16.mxu1 %v1165_v50  ;;  %v1294_v36 = vpop.permute.xlu1 %1293 }
 0x347   : > { %1177 = vmatpush1.bf16.msra.mxu1 %v1164_v2 }
 0x348   : > { %1178 = vmatprep.subr.bf16.mxu1 %v1167_v3 }
 0x34b   : > { %1179 = vmatpush1.bf16.msra.mxu1 %v1166_v47 }
 0x34e   : > { %1501 = vmatmul.mubr.msk.bf16.vlgmr.msra.gmra.mrb[16].mxu1 %vm648_vm0, %v1563_v4 }
 0x421   : > { %v1210_v5 = vpop.f32.mrb[16].mxu1 }
 0x422   : > { %v1212_v6 = vpop.f32.mrb[17].mxu1 }
 0x423   : > { %v1214_v7 = vpop.f32.mrb[18].mxu1 }
 0x424   : > { %v1219_v8 = vadd.f32 %v1214_v7, %v1210_v5  ;;  %v1216_v9 = vpop.f32.mrb[19].mxu1 }
 0x425   : > { %v1226_v10 = vadd.f32 %v1216_v9, %v1212_v6 }
 0x426   : > { %v1220_v11 = vrot.slane %v1219_v8, 4 }
 0x427   : > { %v1227_v12 = vrot.slane %v1226_v10, 4 }
 0x428   : > { %v1221_v13 = vadd.f32 %v1220_v11, %v1219_v8  ;;  %v1314_v8 = vpop.permute.xlu1 %1313 }
 0x429   : > { %v1228_v14 = vadd.f32 %v1227_v12, %v1226_v10 }
 0x42a   : > { %v1222_v15 = vrot.slane %v1221_v13, 2 }
 0x42b   : > { %v1229_v16 = vrot.slane %v1228_v14, 2 }
 0x42c   : > { %v1223_v18 = vadd.f32 %v1222_v15, %v1221_v13  ;;  %v1340_v15 = vlaneseq }
 0x42d   : > { %v1230_v19 = vadd.f32 %v1229_v16, %v1228_v14 }
 0x42e   : > { %v1224_v20 = vrot.slane %v1223_v18, 1  ;;  %vm1366_vm2 = vcmp.lt.s32.totalorder %v1340_v15, 256 }
 0x42f   : > { %v1231_v29 = vrot.slane %v1230_v19, 1 }
 0x430   : > { %v1225_v30 = vadd.f32 %v1224_v20, %v1223_v18 }
 0x431   : > { %v1232_v31 = vadd.f32 %v1231_v29, %v1230_v19  ;;  %v1341_v29 = vshrl.u32 %v1340_v15, 7 }
 0x432   : > { %v1234_v32 = vmul.f32 0.0625, %v1225_v30 }
 0x433   : > { %v1235_v33 = vmul.f32 0.0625, %v1232_v31 }
 0x434   : > { %v1236_v34 = vsub.f32 %v1210_v5, %v1234_v32  ;;  %v1238_v37 = vsub.f32 %v1214_v7, %v1234_v32  ;;  %v1309_v7 = vpop.permute.xlu0 %1308 }
 0x435   : > { %v1237_v46 = vsub.f32 %v1212_v6, %v1235_v33  ;;  %v1239_v38 = vsub.f32 %v1216_v9, %v1235_v33  ;;  %v1637_v33 = vmov 1966171168  }
 0x436   : > { %v1240_v48 = vmul.f32 %v1236_v34, %v1236_v34  ;;  %v1242_v49 = vmul.f32 %v1238_v37, %v1238_v37 }
 0x437   : > { %v1241_v51 = vmul.f32 %v1237_v46, %v1237_v46  ;;  %v1243_v39 = vmul.f32 %v1239_v38, %v1239_v38 }
 0x438   : > { %v1244_v52 = vadd.f32 %v1242_v49, %v1240_v48  ;;  %v1338_v48 = vpop.permute.xlu0 %1337 }
 0x439   : > { %v1251_v40 = vadd.f32 %v1243_v39, %v1241_v51 }
 0x43a   : > { %v1245_v53 = vrot.slane %v1244_v52, 4 }
 0x43b   : > { %v1252_v41 = vrot.slane %v1251_v40, 4 }
 0x43c   : > { %v1246_v54 = vadd.f32 %v1245_v53, %v1244_v52 }
 0x43d   : > { %v1253_v42 = vadd.f32 %v1252_v41, %v1251_v40 }
 0x43e   : > { %v1247_v56 = vrot.slane %v1246_v54, 2 }
 0x43f   : > { %v1254_v43 = vrot.slane %v1253_v42, 2 }
 0x440   : > { %v1248_v21 = vadd.f32 %v1247_v56, %v1246_v54 }
 0x441   : > { %v1255_v22 = vadd.f32 %v1254_v43, %v1253_v42 }
 0x442   : > { %v1249_v23 = vrot.slane %v1248_v21, 1 }
 0x443   : > { %v1256_v24 = vrot.slane %v1255_v22, 1 }
 0x444   : > { %v1250_v28 = vadd.f32 %v1249_v23, %v1248_v21 }
 0x445   : > { %v1257_v44 = vadd.f32 %v1256_v24, %v1255_v22 }
 0x446   : > { %v1258_v25 = vmul.f32 0.0625, %v1250_v28 }
 0x447   : > { %v1259_v45 = vmul.f32 0.0625, %v1257_v44 }
 0x448   : > { %v1260_v26 = vadd.f32 1e-05, %v1258_v25 }
 0x449   : > { %v1261_v55 = vadd.f32 1e-05, %v1259_v45 }
 0x44a   : > { %1568 = vrsqrt.f32 %v1260_v26 }
 0x44b   : > { %1570 = vrsqrt.f32 %v1261_v55 }
 0x454   : > { %v1569_v58 = vpop.eup %1568 }
 0x455   : > { %v1571_v59 = vpop.eup %1570  ;;  %v1264_v60 = vmul.f32 %v1569_v58, %v1236_v34  ;;  %v1266_v61 = vmul.f32 %v1569_v58, %v1238_v37  ;;  %v1350_v34 = vunpack.c.l.s4 %v1637_v33 }
 0x456   : > { %v1265_v17 = vmul.f32 %v1571_v59, %v1237_v46  ;;  %v1267_v62 = vmul.f32 %v1571_v59, %v1239_v38  ;;  %v1342_v46 = vsub.s32 0, %v1341_v29 }
 0x457   : > { %v1280_v63 = vmul.f32 %v1273_v27, %v1264_v60  ;;  %v1282_v0 = vmul.f32 %v1278_v57, %v1266_v61  ;;  %v1351_v39 = vunpack.c.0.s8 %v1350_v34 }
 0x458   : > { %v1281_v1 = vmul.f32 %v1273_v27, %v1265_v17  ;;  %v1283_v2 = vmul.f32 %v1278_v57, %v1267_v62  ;;  %v1343_v40 = vrot.slane %v1338_v48, %v1342_v46 }
 0x459   : > { %v1296_v47 = vadd.f32 %v1289_v35, %v1280_v63  ;;  %v1298_v50 = vadd.f32 %v1294_v36, %v1282_v0  ;;  %v1354_v42 = vsub.s32 %v1351_v39, %v1341_v29 }
 0x45a   : > { %v1297_v3 = vadd.f32 %v1289_v35, %v1281_v1  ;;  %v1299_v4 = vadd.f32 %v1294_v36, %v1283_v2 }
 0x45b   : > { %v1300_v5 = vmax.f32 %v1296_v47, 0.0  ;;  %v1302_v6 = vmax.f32 %v1298_v50, 0.0 }
 0x45c   : > { %v1301_v9 = vmax.f32 %v1297_v3, 0.0  ;;  %v1303_v10 = vmax.f32 %v1299_v4, 0.0 }
 0x45d   : > { %v1316_v11 = vmul.f32 %v1309_v7, %v1300_v5  ;;  %v1318_v12 = vmul.f32 %v1314_v8, %v1302_v6 }
 0x45e   : > { %v1317_v13 = vmul.f32 %v1309_v7, %v1301_v9  ;;  %v1319_v14 = vmul.f32 %v1314_v8, %v1303_v10 }
 0x45f   : > { %v1320_v16 = vadd.f32 %v1318_v12, %v1316_v11 }
 0x460   : > { %v1327_v18 = vadd.f32 %v1319_v14, %v1317_v13 }
 0x461   : > { %v1321_v19 = vrot.slane %v1320_v16, 4 }
 0x462   : > { %v1328_v20 = vrot.slane %v1327_v18, 4 }
 0x463   : > { %v1322_v30 = vadd.f32 %v1321_v19, %v1320_v16 }
 0x464   : > { %v1329_v31 = vadd.f32 %v1328_v20, %v1327_v18 }
 0x465   : > { %v1323_v32 = vrot.slane %v1322_v30, 2 }
 0x466   : > { %v1330_v37 = vrot.slane %v1329_v31, 2 }
 0x467   : > { %v1324_v38 = vadd.f32 %v1323_v32, %v1322_v30 }
 0x468   : > { %v1331_v49 = vadd.f32 %v1330_v37, %v1329_v31 }
 0x469   : > { %v1325_v51 = vrot.slane %v1324_v38, 1 }
 0x46a   : > { %v1332_v52 = vrot.slane %v1331_v49, 1 }
 0x46b   : > { %v1326_v53 = vadd.f32 %v1325_v51, %v1324_v38 }
 0x46c   : > { %v1333_v41 = vadd.f32 %v1332_v52, %v1331_v49 }
 0x46d   : > { %v1344_v54 = vadd.f32 %v1343_v40, %v1326_v53 }
 0x46e   : > { %v1345_v56 = vadd.f32 %v1343_v40, %v1333_v41 }
 0x470   : > { %v1348_v43 = vcombine.low %v1344_v54, %v1345_v56 }
 0x472   : > { %v1355_v21 = vrot.slane %v1348_v43, %v1354_v42 }
 0x474   : > { %v1362_v22 = vrot.slane %v1355_v21, %v1354_v42 }
 0x476   : > { %1368 = vst.msk [vmem:[%s555_s19] sm:$0x3] %vm1366_vm2, %v1362_v22 }
 0x477   : > { %1585 = shalt.err (!%p1582_p5)
}
 0x478   : > { %s1586_s24 = scalar_lea.hbm %s1992_s22, 32  ;;  %s1590_s0 = scalar_lea.hbm %s2050_s14, 64 }
 0x479   : > { %p1587_p7 = scmp.ne.s32.totalorder %s1992_s22, %s1586_s24  ;;  %p1591_p12 = scmp.lt.u32.totalorder %s1992_s22, %s2050_s14 }
 0x47a   : > { %p1592_p13 = scmp.lt.u32.totalorder %s1590_s0, %s1586_s24  ;;  %p1594_p1 = scmp.lt.u32.totalorder %s1586_s24, %s1992_s22 }
 0x47b   : > { %p1588_p10 = pnand %p1587_p7, %p1759_p6 }
 0x47c   : > { %p1593_p0 = por %p1592_p13, %p1591_p12 }
 0x47d   : > { %p1589_p11 = pneg %p1588_p10 }
 0x47e   : > { %p1595_p2 = por %p1594_p1, %p1593_p0 }
 0x480   : > { %p1596_p3 = pnand %p1595_p2, %p1589_p11 }
 0x482   : > { %1599 = shalt.err (!%p1596_p3)
}
 0x483   : > { %1510 = dma.vmem_to_hbm [thread:$0]  (%p1759_p6), %s1994_s21, 32, %s1992_s22, %s1370_s27  }
 0x484 PF: > { %s1396_s2 = sand.u32 1, %s1622_s15   ;;  %p1513_p4 = pnand %p1469_p9, %p1763_p8 }
 0x485   : > { %s1397_s28 = scalar_lea.sflag [#allocation6], %s1396_s2 }
 0x486   : > { %1617 = dma.done.wait (!%p1513_p4), %s1397_s28, 32  }
 0x487   : > { %1619 = vsyncadd (!%p1513_p4), %s1397_s28, 4294967264  ;;  %p26_p5 = scmp.ge.s32.totalorder %s1740_s20, 4   ;;  %s2064_s15 = smov %s1626_s16 }
 0x488   : > { %s2065_s16 = smov %s1630_s17  ;;  %s2066_s17 = smov %s1753_s23 }
 0x489   : > { %s2067_s18 = smov %s1740_s20  ;;  %28 = sbr.rel (!%p26_p5) target bundleno = 7 (0x7), region = 170 }
 0x490   :  { %1402 = vsyncpa [#allocation6], 1 }
 0x491   :  { %1404 = vsyncpa [#allocation6 + $0x1], 1 }

</bundles_post_ra>
